<compile_context>
chip_gen: v5e
topology: v5e:2x2
jax: 0.10.0
libtpu: 0.0.40
codegen_flags: <defaults>
</compile_context>

<pallas_src>
import functools

import jax
import jax.numpy as jnp
from jax.experimental import pallas as pl
from jax.experimental.pallas import tpu as pltpu


def _cutblock_kernel(xm_ref, xh_ref, w1_ref, b1_ref, a_ref, w2_ref, b2_ref,
                     o_ref, xs_ref, hacc_ref, hs_ref, yacc_ref, *,
                     K1, K2, TL, HALO, p2, L1):
    # xm_ref  : (1, cin_p, TL)      main x_work window of this tile        (cdt)
    # xh_ref  : (1, cin_p, HALO)    right halo: next HALO columns of x_work(cdt)
    # w1_ref  : (K1, mid_p, cin_p)  conv1 weights, tap-major               (cdt)
    # b1_ref  : (mid_p, 1)          conv1 bias                             (f32)
    # a_ref   : (mid_p, 1)          PReLU slopes                           (f32)
    # w2_ref  : (K2, out_ch, mid_p) conv2 weights, tap-major               (cdt)
    # b2_ref  : (out_ch, 1)         conv2 bias                             (f32)
    # o_ref   : (1, out_ch, TL)     output tile
    # xs_ref  : (cin_p, TL+HALO)    contiguous x staging scratch           (cdt)
    # hacc_ref: (mid_p, TL+K2-1)    conv1 f32 accumulator scratch          (f32)
    # hs_ref  : (mid_p, TL+K2-1)    PReLU'd / zero-masked h staging        (cdt)
    # yacc_ref: (out_ch, TL)        conv2 f32 accumulator scratch          (f32)
    t = pl.program_id(1)
    TH = TL + K2 - 1                       # width of the h strip this tile needs

    # Stage the main + halo windows contiguously with two full-width aligned
    # copies, so every conv1 tap below is a plain shifted slice of ONE ref.
    xs_ref[:, 0:TL] = xm_ref[0]
    xs_ref[:, TL:TL + HALO] = xh_ref[0]

    # ---- conv1: K1 tap-wise accumulating MXU matmuls (f32 accumulation) -----
    hacc_ref[...] = jnp.broadcast_to(b1_ref[...], hacc_ref.shape)
    for k in range(K1):
        hacc_ref[...] += jnp.dot(w1_ref[k], xs_ref[:, k:k + TH],
                                 preferred_element_type=jnp.float32)

    # ---- PReLU (per mid-channel slope) + conv2 zero-pad boundary mask -------
    # conv2 sees h zero-padded outside [0, L1); only tiles that actually touch
    # the boundary pay for the iota/compare/select.
    def _prelu(v):
        return jnp.where(v > 0, v, a_ref[...] * v)

    start = t * TL - p2
    needs_mask = jnp.logical_or(start < 0, start + (TH - 1) >= L1)

    @pl.when(needs_mask)
    def _():
        g = start + jax.lax.broadcasted_iota(jnp.int32, (1, TH), 1)
        keep = jnp.logical_and(g >= 0, g < L1)
        hs_ref[...] = jnp.where(keep, _prelu(hacc_ref[...]),
                                0.0).astype(hs_ref.dtype)

    @pl.when(jnp.logical_not(needs_mask))
    def _():
        hs_ref[...] = _prelu(hacc_ref[...]).astype(hs_ref.dtype)

    # ---- conv2: K2 tap-wise accumulating MXU matmuls -------------------------
    yacc_ref[...] = jnp.broadcast_to(b2_ref[...], yacc_ref.shape)
    for k in range(K2):
        yacc_ref[...] += jnp.dot(w2_ref[k], hs_ref[:, k:k + TL],
                                 preferred_element_type=jnp.float32)
    o_ref[0] = yacc_ref[...].astype(o_ref.dtype)


def cut_block_forward(params, x, dil=1, *, tile_l=1024,
                      compute_dtype=jnp.bfloat16):
    """Fused CutBlock forward.  x: (N, Cin, L) -> (N, out, L + 12*(dil-1)).

    Matches the torch module: Conv1d dilation stays 1, `dil` only scales the
    padding.  Only stride == 1 (the module default) is supported.
    MXU operands are cast to `compute_dtype` (bf16 by default -- the MXU is
    bf16-native on v5e/v6e/v7x); accumulation / bias / PReLU stay in f32.
    `tile_l` up to 2048 is fine with bf16; keep <=1024 for f32 on v7x.
    """
    # TODO(synk): stride > 1 (non-default module arg) would need a strided
    # output index map; not implemented.
    w1, b1 = params["w1"], params["b1"]
    w2, b2 = params["w2"], params["b2"]
    alpha = params["alpha"]

    N, Cin, L = x.shape
    mid, _, K1 = w1.shape
    out_ch, _, K2 = w2.shape

    p1 = (K1 - 1) // 2 * dil
    p2 = (K2 - 1) // 2 * dil
    H = p1 + p2                                  # left halo of x needed per tile
    L1 = L + 2 * p1 - (K1 - 1)                   # conv1 output length
    L2 = L1 + 2 * p2 - (K2 - 1)                  # final output length

    cdt = jnp.dtype(compute_dtype) if compute_dtype is not None else x.dtype

    # --- length tiling: lane-aligned TL plus one fixed 128-wide halo block ---
    HALO = 128
    assert K1 + K2 - 2 <= HALO, "tap overhang exceeds halo block"
    TL = max(128, (tile_l // 128) * 128)
    TL = min(TL, pl.cdiv(L2, 128) * 128)         # don't tile wider than needed
    num_tiles = pl.cdiv(L2, TL)
    hb = TL // HALO                              # halo-block index stride
    TH = TL + K2 - 1

    # --- sublane-friendly channel padding (weights-only cost is a few KiB) ---
    cin_p = pl.cdiv(Cin, 8) * 8
    mid_p = pl.cdiv(mid, 8) * 8

    # One wrapper-side pass over x: cast to compute dtype + channel pad +
    # H-column left halo + right round-up.  The bf16 cast needs a pass anyway
    # and XLA fuses convert+pad, so the pad itself is ~free.
    # TODO(synk): the halo/round-up zeros could be produced fully in-kernel
    # (masked left-halo BlockSpec) to skip this pass when compute_dtype==x.dtype.
    Lw = num_tiles * TL + HALO
    x_work = jnp.pad(x.astype(cdt),
                     ((0, 0), (0, cin_p - Cin), (H, Lw - H - L)))

    def pack(w, o_pad, i_pad):
        # (O, I, K) -> (K, o_pad, i_pad): tap-major, zero-padded channels.
        O, I, _K = w.shape
        wp = jnp.pad(w, ((0, o_pad - O), (0, i_pad - I), (0, 0)))
        return jnp.transpose(wp, (2, 0, 1)).astype(cdt)

    w1f = pack(w1, mid_p, cin_p)                 # (K1, mid_p, cin_p)
    w2f = pack(w2, out_ch, mid_p)                # (K2, out_ch, mid_p)
    b1p = jnp.pad(b1, (0, mid_p - mid)).reshape(mid_p, 1).astype(jnp.float32)
    a_p = jnp.pad(alpha, (0, mid_p - mid)).reshape(mid_p, 1).astype(jnp.float32)
    b2p = b2.reshape(out_ch, 1).astype(jnp.float32)

    kernel = functools.partial(_cutblock_kernel, K1=K1, K2=K2, TL=TL,
                               HALO=HALO, p2=p2, L1=L1)

    # --- VMEM budget: double-buffered blocks + scratch, capped for v7x -------
    cb = jnp.dtype(cdt).itemsize
    ob = jnp.dtype(x.dtype).itemsize
    est = (2 * cin_p * (TL + HALO) * cb                      # x main + halo
           + 2 * (K1 * mid_p * cin_p + K2 * out_ch * mid_p) * cb
           + 2 * (2 * mid_p + out_ch) * 4                    # bias / alpha
           + 2 * out_ch * TL * ob                            # output block
           + cin_p * (TL + HALO) * cb                        # xs scratch
           + mid_p * TH * (4 + cb)                           # hacc + hs scratch
           + out_ch * TL * 4)                                # yacc scratch
    vmem_limit = int(min(48 * 2 ** 20, max(32 * 2 ** 20, 2 * est)))

    flops = 2 * N * (L1 * mid * Cin * K1 + L2 * out_ch * mid * K2)
    bytes_accessed = int(x_work.size * cb + N * out_ch * L2 * ob
                         + (w1f.size + w2f.size) * cb
                         + (b1p.size + a_p.size + b2p.size) * 4)

    return pl.pallas_call(
        kernel,
        out_shape=jax.ShapeDtypeStruct((N, out_ch, L2), x.dtype),
        grid_spec=pltpu.PrefetchScalarGridSpec(
            num_scalar_prefetch=0,
            grid=(N, num_tiles),
            in_specs=[
                pl.BlockSpec((1, cin_p, TL), lambda n, t: (n, 0, t)),
                pl.BlockSpec((1, cin_p, HALO), lambda n, t: (n, 0, (t + 1) * hb)),
                pl.BlockSpec((K1, mid_p, cin_p), lambda n, t: (0, 0, 0)),
                pl.BlockSpec((mid_p, 1), lambda n, t: (0, 0)),
                pl.BlockSpec((mid_p, 1), lambda n, t: (0, 0)),
                pl.BlockSpec((K2, out_ch, mid_p), lambda n, t: (0, 0, 0)),
                pl.BlockSpec((out_ch, 1), lambda n, t: (0, 0)),
            ],
            out_specs=pl.BlockSpec((1, out_ch, TL), lambda n, t: (n, 0, t)),
            scratch_shapes=[
                pltpu.VMEM((cin_p, TL + HALO), cdt),      # contiguous x staging
                pltpu.VMEM((mid_p, TH), jnp.float32),     # conv1 accumulator
                pltpu.VMEM((mid_p, TH), cdt),             # PReLU'd / masked h
                pltpu.VMEM((out_ch, TL), jnp.float32),    # conv2 accumulator
            ],
        ),
        compiler_params=pltpu.CompilerParams(
            dimension_semantics=("parallel", "parallel"),
            vmem_limit_bytes=vmem_limit),
        cost_estimate=pl.CostEstimate(flops=flops, transcendentals=0,
                                      bytes_accessed=bytes_accessed),
    )(x_work, x_work, w1f, b1p, a_p, w2f, b2p)


def init_cutblock_params(key, channels, out_ch, first_kernel=11, second_kernel=3):
    """Deterministic synthetic init (PyTorch-style uniform bounds, PReLU=0.25)."""
    mid = channels // 2
    k1, k2, k3, k4 = jax.random.split(key, 4)
    bound1 = 1.0 / (channels * first_kernel) ** 0.5
    w1 = jax.random.uniform(k1, (mid, channels, first_kernel), jnp.float32,
                            -bound1, bound1)
    b1 = jax.random.uniform(k2, (mid,), jnp.float32, -bound1, bound1)
    bound2 = 1.0 / (mid * second_kernel) ** 0.5
    w2 = jax.random.uniform(k3, (out_ch, mid, second_kernel), jnp.float32,
                            -bound2, bound2)
    b2 = jax.random.uniform(k4, (out_ch,), jnp.float32, -bound2, bound2)
    alpha = jnp.full((mid,), 0.25, jnp.float32)
    return dict(w1=w1, b1=b1, w2=w2, b2=b2, alpha=alpha)


def _reference_forward(params, x, dil=1):
    K1 = params["w1"].shape[-1]
    K2 = params["w2"].shape[-1]

    def conv(x, w, b, pad):
        y = jax.lax.conv_general_dilated(
            x, w, window_strides=(1,), padding=[(pad, pad)],
            dimension_numbers=("NCH", "OIH", "NCH"))
        return y + b[None, :, None]

    h = conv(x, params["w1"], params["b1"], (K1 - 1) // 2 * dil)
    a = params["alpha"][None, :, None]
    h = jnp.where(h > 0, h, a * h)
    return conv(h, params["w2"], params["b2"], (K2 - 1) // 2 * dil)


if __name__ == "__main__":
    key = jax.random.PRNGKey(0)
    kx, kp = jax.random.split(key)

    N, C, L, OUT = 2, 4, 16, 6
    x = jax.random.normal(kx, (N, C, L), jnp.float32)
    params = init_cutblock_params(kp, C, OUT)

    y_ref = _reference_forward(params, x)

    # f32 compute path: tight structural check against the XLA reference.
    y32 = cut_block_forward(params, x, compute_dtype=jnp.float32)
    jax.block_until_ready(y32)
    assert y32.shape == (N, OUT, L), y32.shape
    assert jnp.allclose(y32, y_ref, atol=1e-4, rtol=1e-4), "f32 dil=1 mismatch"

    # default bf16 compute path (MXU-native): looser tolerance vs f32 reference.
    y16 = cut_block_forward(params, x)
    jax.block_until_ready(y16)
    assert y16.shape == (N, OUT, L), y16.shape
    assert jnp.allclose(y16, y_ref, atol=5e-2, rtol=5e-2), "bf16 dil=1 mismatch"

    # dil = 2: torch keeps dilation=1 but grows padding -> longer output.
    y2 = cut_block_forward(params, x, dil=2, compute_dtype=jnp.float32)
    jax.block_until_ready(y2)
    y2_ref = _reference_forward(params, x, dil=2)
    assert y2.shape == y2_ref.shape, (y2.shape, y2_ref.shape)
    assert jnp.allclose(y2, y2_ref, atol=1e-4, rtol=1e-4), "f32 dil=2 mismatch"

    print("KERNEL_OK")
</pallas_src>

<mosaic_0001>
module attributes {stable_mosaic.version = 11 : i64} {
  func.func @_cutblock_kernel(%arg0: i32, %arg1: i32, %arg2: memref<1x8x128xf32, #tpu.memory_space<vmem>>, %arg3: memref<1x8x128xf32, #tpu.memory_space<vmem>>, %arg4: memref<11x8x8xf32, #tpu.memory_space<vmem>>, %arg5: memref<8x1xf32, #tpu.memory_space<vmem>>, %arg6: memref<8x1xf32, #tpu.memory_space<vmem>>, %arg7: memref<3x6x8xf32, #tpu.memory_space<vmem>>, %arg8: memref<6x1xf32, #tpu.memory_space<vmem>>, %arg9: memref<1x6x128xf32, #tpu.memory_space<vmem>>, %arg10: memref<8x256xf32, #tpu.memory_space<vmem>>, %arg11: memref<8x130xf32, #tpu.memory_space<vmem>>, %arg12: memref<8x130xf32, #tpu.memory_space<vmem>>, %arg13: memref<6x128xf32, #tpu.memory_space<vmem>>) attributes {dimension_semantics = [#tpu.dimension_semantics<parallel>, #tpu.dimension_semantics<parallel>], iteration_bounds = array<i64: 2, 1>, scalar_prefetch = 0 : i64, scratch_operands = 4 : i64, tpu.core_type = #tpu.core_type<tc>, window_params = [{transform_indices = @transform_0, window_bounds = array<i64: 1, 8, 128>}, {transform_indices = @transform_1, window_bounds = array<i64: 1, 8, 128>}, {pipeline_mode = #tpu.pipeline_mode<synchronous>, transform_indices = @transform_2, window_bounds = array<i64: 11, 8, 8>}, {pipeline_mode = #tpu.pipeline_mode<synchronous>, transform_indices = @transform_3, window_bounds = array<i64: 8, 1>}, {pipeline_mode = #tpu.pipeline_mode<synchronous>, transform_indices = @transform_4, window_bounds = array<i64: 8, 1>}, {pipeline_mode = #tpu.pipeline_mode<synchronous>, transform_indices = @transform_5, window_bounds = array<i64: 3, 6, 8>}, {pipeline_mode = #tpu.pipeline_mode<synchronous>, transform_indices = @transform_6, window_bounds = array<i64: 6, 1>}, {transform_indices = @transform_7, window_bounds = array<i64: 1, 6, 128>}]} {
    %c0 = arith.constant 0 : index
    %c0_0 = arith.constant 0 : index
    %c0_1 = arith.constant 0 : index
    %0 = vector.load %arg2[%c0, %c0_0, %c0_1] : memref<1x8x128xf32, #tpu.memory_space<vmem>>, vector<1x8x128xf32>
    %1 = vector.shape_cast %0 : vector<1x8x128xf32> to vector<8x128xf32>
    %c0_2 = arith.constant 0 : index
    %c0_3 = arith.constant 0 : index
    %2 = vector.load %arg10[%c0_2, %c0_3] : memref<8x256xf32, #tpu.memory_space<vmem>>, vector<8x128xf32>
    tpu.vector_store %arg10[%c0_2, %c0_3], %1 {strides = array<i32>} : memref<8x256xf32, #tpu.memory_space<vmem>>, vector<8x128xf32>,
    %c0_4 = arith.constant 0 : index
    %c0_5 = arith.constant 0 : index
    %c0_6 = arith.constant 0 : index
    %3 = vector.load %arg3[%c0_4, %c0_5, %c0_6] : memref<1x8x128xf32, #tpu.memory_space<vmem>>, vector<1x8x128xf32>
    %4 = vector.shape_cast %3 : vector<1x8x128xf32> to vector<8x128xf32>
    %c0_7 = arith.constant 0 : index
    %c128 = arith.constant 128 : index
    %5 = vector.load %arg10[%c0_7, %c128] : memref<8x256xf32, #tpu.memory_space<vmem>>, vector<8x128xf32>
    tpu.vector_store %arg10[%c0_7, %c128], %4 {strides = array<i32>} : memref<8x256xf32, #tpu.memory_space<vmem>>, vector<8x128xf32>,
    %c0_8 = arith.constant 0 : index
    %c0_9 = arith.constant 0 : index
    %6 = vector.load %arg5[%c0_8, %c0_9] : memref<8x1xf32, #tpu.memory_space<vmem>>, vector<8x1xf32>
    %7 = vector.shape_cast %6 : vector<8x1xf32> to vector<8x1xf32>
    %8 = vector.broadcast %7 : vector<8x1xf32> to vector<8x130xf32>
    %c0_10 = arith.constant 0 : index
    %c0_11 = arith.constant 0 : index
    %9 = vector.load %arg11[%c0_10, %c0_11] : memref<8x130xf32, #tpu.memory_space<vmem>>, vector<8x130xf32>
    tpu.vector_store %arg11[%c0_10, %c0_11], %8 {strides = array<i32>} : memref<8x130xf32, #tpu.memory_space<vmem>>, vector<8x130xf32>,
    %c0_12 = arith.constant 0 : index
    %c0_13 = arith.constant 0 : index
    %10 = vector.load %arg11[%c0_12, %c0_13] : memref<8x130xf32, #tpu.memory_space<vmem>>, vector<8x130xf32>
    %c0_14 = arith.constant 0 : index
    %c0_15 = arith.constant 0 : index
    %c0_16 = arith.constant 0 : index
    %11 = vector.load %arg4[%c0_14, %c0_15, %c0_16] : memref<11x8x8xf32, #tpu.memory_space<vmem>>, vector<1x8x8xf32>
    %12 = vector.shape_cast %11 : vector<1x8x8xf32> to vector<8x8xf32>
    %c0_17 = arith.constant 0 : index
    %c0_18 = arith.constant 0 : index
    %13 = vector.load %arg10[%c0_17, %c0_18] : memref<8x256xf32, #tpu.memory_space<vmem>>, vector<8x130xf32>
    %cst = arith.constant dense<0.000000e+00> : vector<8x130xf32>
    %14 = tpu.matmul %12, %13, %cst {dimension_numbers = #tpu.dot_dimension_numbers<[1], [0], [0], [1], [0, 0, 1, 1], [], []>} : vector<8x8xf32>, vector<8x130xf32>, vector<8x130xf32> -> vector<8x130xf32>
    %15 = arith.addf %10, %14 : vector<8x130xf32>
    %c0_19 = arith.constant 0 : index
    %c0_20 = arith.constant 0 : index
    %16 = vector.load %arg11[%c0_19, %c0_20] : memref<8x130xf32, #tpu.memory_space<vmem>>, vector<8x130xf32>
    tpu.vector_store %arg11[%c0_19, %c0_20], %15 {strides = array<i32>} : memref<8x130xf32, #tpu.memory_space<vmem>>, vector<8x130xf32>,
    %c0_21 = arith.constant 0 : index
    %c0_22 = arith.constant 0 : index
    %17 = vector.load %arg11[%c0_21, %c0_22] : memref<8x130xf32, #tpu.memory_space<vmem>>, vector<8x130xf32>
    %c1 = arith.constant 1 : index
    %c0_23 = arith.constant 0 : index
    %c0_24 = arith.constant 0 : index
    %18 = vector.load %arg4[%c1, %c0_23, %c0_24] : memref<11x8x8xf32, #tpu.memory_space<vmem>>, vector<1x8x8xf32>
    %19 = vector.shape_cast %18 : vector<1x8x8xf32> to vector<8x8xf32>
    %c0_25 = arith.constant 0 : index
    %c1_26 = arith.constant 1 : index
    %20 = vector.load %arg10[%c0_25, %c1_26] : memref<8x256xf32, #tpu.memory_space<vmem>>, vector<8x130xf32>
    %cst_27 = arith.constant dense<0.000000e+00> : vector<8x130xf32>
    %21 = tpu.matmul %19, %20, %cst_27 {dimension_numbers = #tpu.dot_dimension_numbers<[1], [0], [0], [1], [0, 0, 1, 1], [], []>} : vector<8x8xf32>, vector<8x130xf32>, vector<8x130xf32> -> vector<8x130xf32>
    %22 = arith.addf %17, %21 : vector<8x130xf32>
    %c0_28 = arith.constant 0 : index
    %c0_29 = arith.constant 0 : index
    %23 = vector.load %arg11[%c0_28, %c0_29] : memref<8x130xf32, #tpu.memory_space<vmem>>, vector<8x130xf32>
    tpu.vector_store %arg11[%c0_28, %c0_29], %22 {strides = array<i32>} : memref<8x130xf32, #tpu.memory_space<vmem>>, vector<8x130xf32>,
    %c0_30 = arith.constant 0 : index
    %c0_31 = arith.constant 0 : index
    %24 = vector.load %arg11[%c0_30, %c0_31] : memref<8x130xf32, #tpu.memory_space<vmem>>, vector<8x130xf32>
    %c2 = arith.constant 2 : index
    %c0_32 = arith.constant 0 : index
    %c0_33 = arith.constant 0 : index
    %25 = vector.load %arg4[%c2, %c0_32, %c0_33] : memref<11x8x8xf32, #tpu.memory_space<vmem>>, vector<1x8x8xf32>
    %26 = vector.shape_cast %25 : vector<1x8x8xf32> to vector<8x8xf32>
    %c0_34 = arith.constant 0 : index
    %c2_35 = arith.constant 2 : index
    %27 = vector.load %arg10[%c0_34, %c2_35] : memref<8x256xf32, #tpu.memory_space<vmem>>, vector<8x130xf32>
    %cst_36 = arith.constant dense<0.000000e+00> : vector<8x130xf32>
    %28 = tpu.matmul %26, %27, %cst_36 {dimension_numbers = #tpu.dot_dimension_numbers<[1], [0], [0], [1], [0, 0, 1, 1], [], []>} : vector<8x8xf32>, vector<8x130xf32>, vector<8x130xf32> -> vector<8x130xf32>
    %29 = arith.addf %24, %28 : vector<8x130xf32>
    %c0_37 = arith.constant 0 : index
    %c0_38 = arith.constant 0 : index
    %30 = vector.load %arg11[%c0_37, %c0_38] : memref<8x130xf32, #tpu.memory_space<vmem>>, vector<8x130xf32>
    tpu.vector_store %arg11[%c0_37, %c0_38], %29 {strides = array<i32>} : memref<8x130xf32, #tpu.memory_space<vmem>>, vector<8x130xf32>,
    %c0_39 = arith.constant 0 : index
    %c0_40 = arith.constant 0 : index
    %31 = vector.load %arg11[%c0_39, %c0_40] : memref<8x130xf32, #tpu.memory_space<vmem>>, vector<8x130xf32>
    %c3 = arith.constant 3 : index
    %c0_41 = arith.constant 0 : index
    %c0_42 = arith.constant 0 : index
    %32 = vector.load %arg4[%c3, %c0_41, %c0_42] : memref<11x8x8xf32, #tpu.memory_space<vmem>>, vector<1x8x8xf32>
    %33 = vector.shape_cast %32 : vector<1x8x8xf32> to vector<8x8xf32>
    %c0_43 = arith.constant 0 : index
    %c3_44 = arith.constant 3 : index
    %34 = vector.load %arg10[%c0_43, %c3_44] : memref<8x256xf32, #tpu.memory_space<vmem>>, vector<8x130xf32>
    %cst_45 = arith.constant dense<0.000000e+00> : vector<8x130xf32>
    %35 = tpu.matmul %33, %34, %cst_45 {dimension_numbers = #tpu.dot_dimension_numbers<[1], [0], [0], [1], [0, 0, 1, 1], [], []>} : vector<8x8xf32>, vector<8x130xf32>, vector<8x130xf32> -> vector<8x130xf32>
    %36 = arith.addf %31, %35 : vector<8x130xf32>
    %c0_46 = arith.constant 0 : index
    %c0_47 = arith.constant 0 : index
    %37 = vector.load %arg11[%c0_46, %c0_47] : memref<8x130xf32, #tpu.memory_space<vmem>>, vector<8x130xf32>
    tpu.vector_store %arg11[%c0_46, %c0_47], %36 {strides = array<i32>} : memref<8x130xf32, #tpu.memory_space<vmem>>, vector<8x130xf32>,
    %c0_48 = arith.constant 0 : index
    %c0_49 = arith.constant 0 : index
    %38 = vector.load %arg11[%c0_48, %c0_49] : memref<8x130xf32, #tpu.memory_space<vmem>>, vector<8x130xf32>
    %c4 = arith.constant 4 : index
    %c0_50 = arith.constant 0 : index
    %c0_51 = arith.constant 0 : index
    %39 = vector.load %arg4[%c4, %c0_50, %c0_51] : memref<11x8x8xf32, #tpu.memory_space<vmem>>, vector<1x8x8xf32>
    %40 = vector.shape_cast %39 : vector<1x8x8xf32> to vector<8x8xf32>
    %c0_52 = arith.constant 0 : index
    %c4_53 = arith.constant 4 : index
    %41 = vector.load %arg10[%c0_52, %c4_53] : memref<8x256xf32, #tpu.memory_space<vmem>>, vector<8x130xf32>
    %cst_54 = arith.constant dense<0.000000e+00> : vector<8x130xf32>
    %42 = tpu.matmul %40, %41, %cst_54 {dimension_numbers = #tpu.dot_dimension_numbers<[1], [0], [0], [1], [0, 0, 1, 1], [], []>} : vector<8x8xf32>, vector<8x130xf32>, vector<8x130xf32> -> vector<8x130xf32>
    %43 = arith.addf %38, %42 : vector<8x130xf32>
    %c0_55 = arith.constant 0 : index
    %c0_56 = arith.constant 0 : index
    %44 = vector.load %arg11[%c0_55, %c0_56] : memref<8x130xf32, #tpu.memory_space<vmem>>, vector<8x130xf32>
    tpu.vector_store %arg11[%c0_55, %c0_56], %43 {strides = array<i32>} : memref<8x130xf32, #tpu.memory_space<vmem>>, vector<8x130xf32>,
    %c0_57 = arith.constant 0 : index
    %c0_58 = arith.constant 0 : index
    %45 = vector.load %arg11[%c0_57, %c0_58] : memref<8x130xf32, #tpu.memory_space<vmem>>, vector<8x130xf32>
    %c5 = arith.constant 5 : index
    %c0_59 = arith.constant 0 : index
    %c0_60 = arith.constant 0 : index
    %46 = vector.load %arg4[%c5, %c0_59, %c0_60] : memref<11x8x8xf32, #tpu.memory_space<vmem>>, vector<1x8x8xf32>
    %47 = vector.shape_cast %46 : vector<1x8x8xf32> to vector<8x8xf32>
    %c0_61 = arith.constant 0 : index
    %c5_62 = arith.constant 5 : index
    %48 = vector.load %arg10[%c0_61, %c5_62] : memref<8x256xf32, #tpu.memory_space<vmem>>, vector<8x130xf32>
    %cst_63 = arith.constant dense<0.000000e+00> : vector<8x130xf32>
    %49 = tpu.matmul %47, %48, %cst_63 {dimension_numbers = #tpu.dot_dimension_numbers<[1], [0], [0], [1], [0, 0, 1, 1], [], []>} : vector<8x8xf32>, vector<8x130xf32>, vector<8x130xf32> -> vector<8x130xf32>
    %50 = arith.addf %45, %49 : vector<8x130xf32>
    %c0_64 = arith.constant 0 : index
    %c0_65 = arith.constant 0 : index
    %51 = vector.load %arg11[%c0_64, %c0_65] : memref<8x130xf32, #tpu.memory_space<vmem>>, vector<8x130xf32>
    tpu.vector_store %arg11[%c0_64, %c0_65], %50 {strides = array<i32>} : memref<8x130xf32, #tpu.memory_space<vmem>>, vector<8x130xf32>,
    %c0_66 = arith.constant 0 : index
    %c0_67 = arith.constant 0 : index
    %52 = vector.load %arg11[%c0_66, %c0_67] : memref<8x130xf32, #tpu.memory_space<vmem>>, vector<8x130xf32>
    %c6 = arith.constant 6 : index
    %c0_68 = arith.constant 0 : index
    %c0_69 = arith.constant 0 : index
    %53 = vector.load %arg4[%c6, %c0_68, %c0_69] : memref<11x8x8xf32, #tpu.memory_space<vmem>>, vector<1x8x8xf32>
    %54 = vector.shape_cast %53 : vector<1x8x8xf32> to vector<8x8xf32>
    %c0_70 = arith.constant 0 : index
    %c6_71 = arith.constant 6 : index
    %55 = vector.load %arg10[%c0_70, %c6_71] : memref<8x256xf32, #tpu.memory_space<vmem>>, vector<8x130xf32>
    %cst_72 = arith.constant dense<0.000000e+00> : vector<8x130xf32>
    %56 = tpu.matmul %54, %55, %cst_72 {dimension_numbers = #tpu.dot_dimension_numbers<[1], [0], [0], [1], [0, 0, 1, 1], [], []>} : vector<8x8xf32>, vector<8x130xf32>, vector<8x130xf32> -> vector<8x130xf32>
    %57 = arith.addf %52, %56 : vector<8x130xf32>
    %c0_73 = arith.constant 0 : index
    %c0_74 = arith.constant 0 : index
    %58 = vector.load %arg11[%c0_73, %c0_74] : memref<8x130xf32, #tpu.memory_space<vmem>>, vector<8x130xf32>
    tpu.vector_store %arg11[%c0_73, %c0_74], %57 {strides = array<i32>} : memref<8x130xf32, #tpu.memory_space<vmem>>, vector<8x130xf32>,
    %c0_75 = arith.constant 0 : index
    %c0_76 = arith.constant 0 : index
    %59 = vector.load %arg11[%c0_75, %c0_76] : memref<8x130xf32, #tpu.memory_space<vmem>>, vector<8x130xf32>
    %c7 = arith.constant 7 : index
    %c0_77 = arith.constant 0 : index
    %c0_78 = arith.constant 0 : index
    %60 = vector.load %arg4[%c7, %c0_77, %c0_78] : memref<11x8x8xf32, #tpu.memory_space<vmem>>, vector<1x8x8xf32>
    %61 = vector.shape_cast %60 : vector<1x8x8xf32> to vector<8x8xf32>
    %c0_79 = arith.constant 0 : index
    %c7_80 = arith.constant 7 : index
    %62 = vector.load %arg10[%c0_79, %c7_80] : memref<8x256xf32, #tpu.memory_space<vmem>>, vector<8x130xf32>
    %cst_81 = arith.constant dense<0.000000e+00> : vector<8x130xf32>
    %63 = tpu.matmul %61, %62, %cst_81 {dimension_numbers = #tpu.dot_dimension_numbers<[1], [0], [0], [1], [0, 0, 1, 1], [], []>} : vector<8x8xf32>, vector<8x130xf32>, vector<8x130xf32> -> vector<8x130xf32>
    %64 = arith.addf %59, %63 : vector<8x130xf32>
    %c0_82 = arith.constant 0 : index
    %c0_83 = arith.constant 0 : index
    %65 = vector.load %arg11[%c0_82, %c0_83] : memref<8x130xf32, #tpu.memory_space<vmem>>, vector<8x130xf32>
    tpu.vector_store %arg11[%c0_82, %c0_83], %64 {strides = array<i32>} : memref<8x130xf32, #tpu.memory_space<vmem>>, vector<8x130xf32>,
    %c0_84 = arith.constant 0 : index
    %c0_85 = arith.constant 0 : index
    %66 = vector.load %arg11[%c0_84, %c0_85] : memref<8x130xf32, #tpu.memory_space<vmem>>, vector<8x130xf32>
    %c8 = arith.constant 8 : index
    %c0_86 = arith.constant 0 : index
    %c0_87 = arith.constant 0 : index
    %67 = vector.load %arg4[%c8, %c0_86, %c0_87] : memref<11x8x8xf32, #tpu.memory_space<vmem>>, vector<1x8x8xf32>
    %68 = vector.shape_cast %67 : vector<1x8x8xf32> to vector<8x8xf32>
    %c0_88 = arith.constant 0 : index
    %c8_89 = arith.constant 8 : index
    %69 = vector.load %arg10[%c0_88, %c8_89] : memref<8x256xf32, #tpu.memory_space<vmem>>, vector<8x130xf32>
    %cst_90 = arith.constant dense<0.000000e+00> : vector<8x130xf32>
    %70 = tpu.matmul %68, %69, %cst_90 {dimension_numbers = #tpu.dot_dimension_numbers<[1], [0], [0], [1], [0, 0, 1, 1], [], []>} : vector<8x8xf32>, vector<8x130xf32>, vector<8x130xf32> -> vector<8x130xf32>
    %71 = arith.addf %66, %70 : vector<8x130xf32>
    %c0_91 = arith.constant 0 : index
    %c0_92 = arith.constant 0 : index
    %72 = vector.load %arg11[%c0_91, %c0_92] : memref<8x130xf32, #tpu.memory_space<vmem>>, vector<8x130xf32>
    tpu.vector_store %arg11[%c0_91, %c0_92], %71 {strides = array<i32>} : memref<8x130xf32, #tpu.memory_space<vmem>>, vector<8x130xf32>,
    %c0_93 = arith.constant 0 : index
    %c0_94 = arith.constant 0 : index
    %73 = vector.load %arg11[%c0_93, %c0_94] : memref<8x130xf32, #tpu.memory_space<vmem>>, vector<8x130xf32>
    %c9 = arith.constant 9 : index
    %c0_95 = arith.constant 0 : index
    %c0_96 = arith.constant 0 : index
    %74 = vector.load %arg4[%c9, %c0_95, %c0_96] : memref<11x8x8xf32, #tpu.memory_space<vmem>>, vector<1x8x8xf32>
    %75 = vector.shape_cast %74 : vector<1x8x8xf32> to vector<8x8xf32>
    %c0_97 = arith.constant 0 : index
    %c9_98 = arith.constant 9 : index
    %76 = vector.load %arg10[%c0_97, %c9_98] : memref<8x256xf32, #tpu.memory_space<vmem>>, vector<8x130xf32>
    %cst_99 = arith.constant dense<0.000000e+00> : vector<8x130xf32>
    %77 = tpu.matmul %75, %76, %cst_99 {dimension_numbers = #tpu.dot_dimension_numbers<[1], [0], [0], [1], [0, 0, 1, 1], [], []>} : vector<8x8xf32>, vector<8x130xf32>, vector<8x130xf32> -> vector<8x130xf32>
    %78 = arith.addf %73, %77 : vector<8x130xf32>
    %c0_100 = arith.constant 0 : index
    %c0_101 = arith.constant 0 : index
    %79 = vector.load %arg11[%c0_100, %c0_101] : memref<8x130xf32, #tpu.memory_space<vmem>>, vector<8x130xf32>
    tpu.vector_store %arg11[%c0_100, %c0_101], %78 {strides = array<i32>} : memref<8x130xf32, #tpu.memory_space<vmem>>, vector<8x130xf32>,
    %c0_102 = arith.constant 0 : index
    %c0_103 = arith.constant 0 : index
    %80 = vector.load %arg11[%c0_102, %c0_103] : memref<8x130xf32, #tpu.memory_space<vmem>>, vector<8x130xf32>
    %c10 = arith.constant 10 : index
    %c0_104 = arith.constant 0 : index
    %c0_105 = arith.constant 0 : index
    %81 = vector.load %arg4[%c10, %c0_104, %c0_105] : memref<11x8x8xf32, #tpu.memory_space<vmem>>, vector<1x8x8xf32>
    %82 = vector.shape_cast %81 : vector<1x8x8xf32> to vector<8x8xf32>
    %c0_106 = arith.constant 0 : index
    %c10_107 = arith.constant 10 : index
    %83 = vector.load %arg10[%c0_106, %c10_107] : memref<8x256xf32, #tpu.memory_space<vmem>>, vector<8x130xf32>
    %cst_108 = arith.constant dense<0.000000e+00> : vector<8x130xf32>
    %84 = tpu.matmul %82, %83, %cst_108 {dimension_numbers = #tpu.dot_dimension_numbers<[1], [0], [0], [1], [0, 0, 1, 1], [], []>} : vector<8x8xf32>, vector<8x130xf32>, vector<8x130xf32> -> vector<8x130xf32>
    %85 = arith.addf %80, %84 : vector<8x130xf32>
    %c0_109 = arith.constant 0 : index
    %c0_110 = arith.constant 0 : index
    %86 = vector.load %arg11[%c0_109, %c0_110] : memref<8x130xf32, #tpu.memory_space<vmem>>, vector<8x130xf32>
    tpu.vector_store %arg11[%c0_109, %c0_110], %85 {strides = array<i32>} : memref<8x130xf32, #tpu.memory_space<vmem>>, vector<8x130xf32>,
    %c128_i32 = arith.constant 128 : i32
    %87 = arith.muli %arg1, %c128_i32 : i32
    %c1_i32 = arith.constant 1 : i32
    %88 = arith.subi %87, %c1_i32 : i32
    %c0_i32 = arith.constant 0 : i32
    %89 = arith.cmpi slt, %88, %c0_i32 : i32
    %c129_i32 = arith.constant 129 : i32
    %90 = arith.addi %88, %c129_i32 : i32
    %c16_i32 = arith.constant 16 : i32
    %91 = arith.cmpi sge, %90, %c16_i32 : i32
    %92 = arith.ori %89, %91 : i1
    %93 = arith.extui %92 : i1 to i32
    %c0_i32_111 = arith.constant 0 : i32
    %94 = arith.cmpi ne, %93, %c0_i32_111 : i32
    scf.if %94 {
      %127 = tpu.iota {dimensions = array<i32: 1>} : vector<1x130xi32>
      %128 = vector.broadcast %88 : i32 to vector<1x130xi32>
      %129 = arith.addi %128, %127 : vector<1x130xi32>
      %c0_i32_152 = arith.constant 0 : i32
      %130 = vector.broadcast %c0_i32_152 : i32 to vector<1x130xi32>
      %131 = arith.cmpi sge, %129, %130 : vector<1x130xi32>
      %c16_i32_153 = arith.constant 16 : i32
      %132 = vector.broadcast %c16_i32_153 : i32 to vector<1x130xi32>
      %133 = arith.cmpi slt, %129, %132 : vector<1x130xi32>
      %134 = arith.andi %131, %133 : vector<1x130xi1>
      %c0_154 = arith.constant 0 : index
      %c0_155 = arith.constant 0 : index
      %135 = vector.load %arg11[%c0_154, %c0_155] : memref<8x130xf32, #tpu.memory_space<vmem>>, vector<8x130xf32>
      %cst_156 = arith.constant 0.000000e+00 : f32
      %136 = vector.broadcast %cst_156 : f32 to vector<8x130xf32>
      %137 = arith.cmpf ogt, %135, %136 : vector<8x130xf32>
      %c0_157 = arith.constant 0 : index
      %c0_158 = arith.constant 0 : index
      %138 = vector.load %arg6[%c0_157, %c0_158] : memref<8x1xf32, #tpu.memory_space<vmem>>, vector<8x1xf32>
      %139 = vector.broadcast %138 : vector<8x1xf32> to vector<8x130xf32>
      %140 = arith.mulf %139, %135 : vector<8x130xf32>
      %141 = arith.select %137, %135, %140 : vector<8x130xi1>, vector<8x130xf32>
      %cst_159 = arith.constant 0.000000e+00 : f32
      %142 = vector.shape_cast %134 : vector<1x130xi1> to vector<1x130xi1>
      %143 = vector.broadcast %142 : vector<1x130xi1> to vector<8x130xi1>
      %144 = vector.broadcast %cst_159 : f32 to vector<8x130xf32>
      %145 = arith.select %143, %141, %144 : vector<8x130xi1>, vector<8x130xf32>
      %c0_160 = arith.constant 0 : index
      %c0_161 = arith.constant 0 : index
      %146 = vector.load %arg12[%c0_160, %c0_161] : memref<8x130xf32, #tpu.memory_space<vmem>>, vector<8x130xf32>
      tpu.vector_store %arg12[%c0_160, %c0_161], %145 {strides = array<i32>} : memref<8x130xf32, #tpu.memory_space<vmem>>, vector<8x130xf32>,
    } else {
    }
    %true = arith.constant true
    %95 = arith.xori %92, %true : i1
    %96 = arith.extui %95 : i1 to i32
    %c0_i32_112 = arith.constant 0 : i32
    %97 = arith.cmpi ne, %96, %c0_i32_112 : i32
    scf.if %97 {
      %c0_152 = arith.constant 0 : index
      %c0_153 = arith.constant 0 : index
      %127 = vector.load %arg11[%c0_152, %c0_153] : memref<8x130xf32, #tpu.memory_space<vmem>>, vector<8x130xf32>
      %cst_154 = arith.constant 0.000000e+00 : f32
      %128 = vector.broadcast %cst_154 : f32 to vector<8x130xf32>
      %129 = arith.cmpf ogt, %127, %128 : vector<8x130xf32>
      %c0_155 = arith.constant 0 : index
      %c0_156 = arith.constant 0 : index
      %130 = vector.load %arg6[%c0_155, %c0_156] : memref<8x1xf32, #tpu.memory_space<vmem>>, vector<8x1xf32>
      %131 = vector.broadcast %130 : vector<8x1xf32> to vector<8x130xf32>
      %132 = arith.mulf %131, %127 : vector<8x130xf32>
      %133 = arith.select %129, %127, %132 : vector<8x130xi1>, vector<8x130xf32>
      %c0_157 = arith.constant 0 : index
      %c0_158 = arith.constant 0 : index
      %134 = vector.load %arg12[%c0_157, %c0_158] : memref<8x130xf32, #tpu.memory_space<vmem>>, vector<8x130xf32>
      tpu.vector_store %arg12[%c0_157, %c0_158], %133 {strides = array<i32>} : memref<8x130xf32, #tpu.memory_space<vmem>>, vector<8x130xf32>,
    } else {
    }
    %c0_113 = arith.constant 0 : index
    %c0_114 = arith.constant 0 : index
    %98 = vector.load %arg8[%c0_113, %c0_114] : memref<6x1xf32, #tpu.memory_space<vmem>>, vector<6x1xf32>
    %99 = vector.shape_cast %98 : vector<6x1xf32> to vector<6x1xf32>
    %100 = vector.broadcast %99 : vector<6x1xf32> to vector<6x128xf32>
    %c0_115 = arith.constant 0 : index
    %c0_116 = arith.constant 0 : index
    %101 = vector.load %arg13[%c0_115, %c0_116] : memref<6x128xf32, #tpu.memory_space<vmem>>, vector<6x128xf32>
    tpu.vector_store %arg13[%c0_115, %c0_116], %100 {strides = array<i32>} : memref<6x128xf32, #tpu.memory_space<vmem>>, vector<6x128xf32>,
    %c0_117 = arith.constant 0 : index
    %c0_118 = arith.constant 0 : index
    %102 = vector.load %arg13[%c0_117, %c0_118] : memref<6x128xf32, #tpu.memory_space<vmem>>, vector<6x128xf32>
    %c0_119 = arith.constant 0 : index
    %c0_120 = arith.constant 0 : index
    %c0_121 = arith.constant 0 : index
    %103 = vector.load %arg7[%c0_119, %c0_120, %c0_121] : memref<3x6x8xf32, #tpu.memory_space<vmem>>, vector<1x6x8xf32>
    %104 = vector.shape_cast %103 : vector<1x6x8xf32> to vector<6x8xf32>
    %c0_122 = arith.constant 0 : index
    %c0_123 = arith.constant 0 : index
    %105 = vector.load %arg12[%c0_122, %c0_123] : memref<8x130xf32, #tpu.memory_space<vmem>>, vector<8x128xf32>
    %cst_124 = arith.constant dense<0.000000e+00> : vector<6x128xf32>
    %106 = tpu.matmul %104, %105, %cst_124 {dimension_numbers = #tpu.dot_dimension_numbers<[1], [0], [0], [1], [0, 0, 1, 1], [], []>} : vector<6x8xf32>, vector<8x128xf32>, vector<6x128xf32> -> vector<6x128xf32>
    %107 = arith.addf %102, %106 : vector<6x128xf32>
    %c0_125 = arith.constant 0 : index
    %c0_126 = arith.constant 0 : index
    %108 = vector.load %arg13[%c0_125, %c0_126] : memref<6x128xf32, #tpu.memory_space<vmem>>, vector<6x128xf32>
    tpu.vector_store %arg13[%c0_125, %c0_126], %107 {strides = array<i32>} : memref<6x128xf32, #tpu.memory_space<vmem>>, vector<6x128xf32>,
    %c0_127 = arith.constant 0 : index
    %c0_128 = arith.constant 0 : index
    %109 = vector.load %arg13[%c0_127, %c0_128] : memref<6x128xf32, #tpu.memory_space<vmem>>, vector<6x128xf32>
    %c1_129 = arith.constant 1 : index
    %c0_130 = arith.constant 0 : index
    %c0_131 = arith.constant 0 : index
    %110 = vector.load %arg7[%c1_129, %c0_130, %c0_131] : memref<3x6x8xf32, #tpu.memory_space<vmem>>, vector<1x6x8xf32>
    %111 = vector.shape_cast %110 : vector<1x6x8xf32> to vector<6x8xf32>
    %c0_132 = arith.constant 0 : index
    %c1_133 = arith.constant 1 : index
    %112 = vector.load %arg12[%c0_132, %c1_133] : memref<8x130xf32, #tpu.memory_space<vmem>>, vector<8x128xf32>
    %cst_134 = arith.constant dense<0.000000e+00> : vector<6x128xf32>
    %113 = tpu.matmul %111, %112, %cst_134 {dimension_numbers = #tpu.dot_dimension_numbers<[1], [0], [0], [1], [0, 0, 1, 1], [], []>} : vector<6x8xf32>, vector<8x128xf32>, vector<6x128xf32> -> vector<6x128xf32>
    %114 = arith.addf %109, %113 : vector<6x128xf32>
    %c0_135 = arith.constant 0 : index
    %c0_136 = arith.constant 0 : index
    %115 = vector.load %arg13[%c0_135, %c0_136] : memref<6x128xf32, #tpu.memory_space<vmem>>, vector<6x128xf32>
    tpu.vector_store %arg13[%c0_135, %c0_136], %114 {strides = array<i32>} : memref<6x128xf32, #tpu.memory_space<vmem>>, vector<6x128xf32>,
    %c0_137 = arith.constant 0 : index
    %c0_138 = arith.constant 0 : index
    %116 = vector.load %arg13[%c0_137, %c0_138] : memref<6x128xf32, #tpu.memory_space<vmem>>, vector<6x128xf32>
    %c2_139 = arith.constant 2 : index
    %c0_140 = arith.constant 0 : index
    %c0_141 = arith.constant 0 : index
    %117 = vector.load %arg7[%c2_139, %c0_140, %c0_141] : memref<3x6x8xf32, #tpu.memory_space<vmem>>, vector<1x6x8xf32>
    %118 = vector.shape_cast %117 : vector<1x6x8xf32> to vector<6x8xf32>
    %c0_142 = arith.constant 0 : index
    %c2_143 = arith.constant 2 : index
    %119 = vector.load %arg12[%c0_142, %c2_143] : memref<8x130xf32, #tpu.memory_space<vmem>>, vector<8x128xf32>
    %cst_144 = arith.constant dense<0.000000e+00> : vector<6x128xf32>
    %120 = tpu.matmul %118, %119, %cst_144 {dimension_numbers = #tpu.dot_dimension_numbers<[1], [0], [0], [1], [0, 0, 1, 1], [], []>} : vector<6x8xf32>, vector<8x128xf32>, vector<6x128xf32> -> vector<6x128xf32>
    %121 = arith.addf %116, %120 : vector<6x128xf32>
    %c0_145 = arith.constant 0 : index
    %c0_146 = arith.constant 0 : index
    %122 = vector.load %arg13[%c0_145, %c0_146] : memref<6x128xf32, #tpu.memory_space<vmem>>, vector<6x128xf32>
    tpu.vector_store %arg13[%c0_145, %c0_146], %121 {strides = array<i32>} : memref<6x128xf32, #tpu.memory_space<vmem>>, vector<6x128xf32>,
    %c0_147 = arith.constant 0 : index
    %c0_148 = arith.constant 0 : index
    %123 = vector.load %arg13[%c0_147, %c0_148] : memref<6x128xf32, #tpu.memory_space<vmem>>, vector<6x128xf32>
    %c0_149 = arith.constant 0 : index
    %c0_150 = arith.constant 0 : index
    %c0_151 = arith.constant 0 : index
    %124 = vector.load %arg9[%c0_149, %c0_150, %c0_151] : memref<1x6x128xf32, #tpu.memory_space<vmem>>, vector<1x6x128xf32>
    %125 = vector.shape_cast %124 : vector<1x6x128xf32> to vector<6x128xf32>
    %126 = vector.shape_cast %123 : vector<6x128xf32> to vector<1x6x128xf32>
    tpu.vector_store %arg9[%c0_149, %c0_150, %c0_151], %126 {strides = array<i32>} : memref<1x6x128xf32, #tpu.memory_space<vmem>>, vector<1x6x128xf32>,
    return
  }
  func.func @transform_0(%arg0: i32, %arg1: i32) -> (i32, i32, i32) {
    %c0_i32 = arith.constant 0 : i32
    %c0_i32_0 = arith.constant 0 : i32
    return %arg0, %c0_i32, %arg1 : i32, i32, i32
  }
  func.func @transform_1(%arg0: i32, %arg1: i32) -> (i32, i32, i32) {
    %c1_i32 = arith.constant 1 : i32
    %0 = arith.addi %arg1, %c1_i32 : i32
    %c1_i32_0 = arith.constant 1 : i32
    %1 = arith.muli %0, %c1_i32_0 : i32
    %c0_i32 = arith.constant 0 : i32
    %c0_i32_1 = arith.constant 0 : i32
    return %arg0, %c0_i32, %1 : i32, i32, i32
  }
  func.func @transform_2(%arg0: i32, %arg1: i32) -> (i32, i32, i32) {
    %c0_i32 = arith.constant 0 : i32
    %c0_i32_0 = arith.constant 0 : i32
    %c0_i32_1 = arith.constant 0 : i32
    %c0_i32_2 = arith.constant 0 : i32
    return %c0_i32, %c0_i32_0, %c0_i32_1 : i32, i32, i32
  }
  func.func @transform_3(%arg0: i32, %arg1: i32) -> (i32, i32) {
    %c0_i32 = arith.constant 0 : i32
    %c0_i32_0 = arith.constant 0 : i32
    %c0_i32_1 = arith.constant 0 : i32
    return %c0_i32, %c0_i32_0 : i32, i32
  }
  func.func @transform_4(%arg0: i32, %arg1: i32) -> (i32, i32) {
    %c0_i32 = arith.constant 0 : i32
    %c0_i32_0 = arith.constant 0 : i32
    %c0_i32_1 = arith.constant 0 : i32
    return %c0_i32, %c0_i32_0 : i32, i32
  }
  func.func @transform_5(%arg0: i32, %arg1: i32) -> (i32, i32, i32) {
    %c0_i32 = arith.constant 0 : i32
    %c0_i32_0 = arith.constant 0 : i32
    %c0_i32_1 = arith.constant 0 : i32
    %c0_i32_2 = arith.constant 0 : i32
    return %c0_i32, %c0_i32_0, %c0_i32_1 : i32, i32, i32
  }
  func.func @transform_6(%arg0: i32, %arg1: i32) -> (i32, i32) {
    %c0_i32 = arith.constant 0 : i32
    %c0_i32_0 = arith.constant 0 : i32
    %c0_i32_1 = arith.constant 0 : i32
    return %c0_i32, %c0_i32_0 : i32, i32
  }
  func.func @transform_7(%arg0: i32, %arg1: i32) -> (i32, i32, i32) {
    %c0_i32 = arith.constant 0 : i32
    %c0_i32_0 = arith.constant 0 : i32
    return %arg0, %c0_i32, %arg1 : i32, i32, i32
  }
}

</mosaic_0001>

<bundles_post_ra>
// kernel: tpu_custom_call.1
= control target key start
LH: loop header
LB: loop body
LE: loop exit
PB: predicated region body
PF: predicated region fallthrough
CT: control target
= control target key end

     0   :  { %s1541_s24 = smov 0   ;;  %s1543_s25 = smov 0   ;;  %s1678_s0 = inlined_call_operand.vmem [shape: f32[2,8,256], index: 0, kind: input, shape index: {}]   ;;  %s1679_s1 = inlined_call_operand.vmem [shape: f32[2,8,256], index: 1, kind: input, shape index: {}]   ;;  %s1680_s2 = inlined_call_operand.vmem [shape: f32[11,8,8], index: 2, kind: input, shape index: {}]   ;;  %s1681_s3 = inlined_call_operand.vmem [shape: f32[8,1], index: 3, kind: input, shape index: {}]   ;;  %s1682_s4 = inlined_call_operand.vmem [shape: f32[8,1], index: 4, kind: input, shape index: {}]   ;;  %s1683_s5 = inlined_call_operand.vmem [shape: f32[3,6,8], index: 5, kind: input, shape index: {}]   ;;  %s1684_s6 = inlined_call_operand.vmem [shape: f32[6,1], index: 6, kind: input, shape index: {}]   ;;  %s1685_s7 = inlined_call_operand.vmem [shape: f32[2,6,16], index: 7, kind: output, shape index: {}]  }
   0x1   :  { %s1545_s26 = smov 0  }
   0x2 LB: > { %s29_s27 = sadd.s32 1, %s1483_s25  ;;  %p1316_p0 = scmp.ge.s32.totalorder %s1487_s26, 1  ;;  %s1487_s26 = sphi %s1545_s26, %s17_s26   ;;  %s1483_s25 = sphi %s1543_s25, %s1687_s25   ;;  %s1479_s24 = sphi %s1541_s24, %s1686_s24  }
   0x3   : > { %p31_p1 = scmp.ge.s32.totalorder %s29_s27, 2  ;;  %p275_p2 = scmp.lt.s32.totalorder %s1487_s26, 3 }
   0x5   : > { %s1689_s27 = smov (%p31_p1, %s29_s27), 0  ;;  %p276_p3 = pnand %p1316_p0, %p275_p2 }
   0x6   : > { %p321_p4 = scmp.lt.s32.totalorder (!%p276_p3), %s1479_s24, 1  ;;  %s1489_s13 = smov (!%p276_p3), 127  }
   0x7   : > { %279 = sbr.rel (%p276_p3) target bundleno = 584 (0x248), region = 48  ;;  %s1490_s14 = smov (!%p276_p3), 125  }
   0x8   : > { %s1491_s15 = smov (!%p276_p3), 123   ;;  %s1492_s16 = smov (!%p276_p3), 126  }
   0x9   : > { %s1493_s17 = smov (!%p276_p3), 124   ;;  %s1494_s18 = smov (!%p276_p3), 122  }
   0xa   : > { %s1495_s19 = smov (!%p276_p3), 121   ;;  %s1496_s20 = smov (!%p276_p3), 120  }
   0xb   : > { %s1497_s21 = smov (!%p276_p3), 119   ;;  %s1498_s22 = smov (!%p276_p3), 118  }
   0xc   : > { %s1691_s24 = smov (!%p321_p4, %s1479_s24), 1  ;;  %v361_v3 = vld [vmem:[%s1680_s2] sm:$0xff]  ;;  %vm364_vm0 = vcmask 64512   ;;  %v1499_v4 = vmov 0   ;;  %vm424_vm1 = vcmask 1039360   ;;  %vm550_vm2 = vcmask 1022976  }
   0xd   : > { %s1361_s28 = sshll.u32 %s1691_s24, 4  ;;  %1451 = vset.pattern.permute.xlu1 %v1499_v4  ;;  %v350_v5 = vld [vmem:[%s1681_s3] sm:$0xff]  ;;  %1452 = vset.pattern.permute.xlu2 %v1499_v4  ;;  %vm676_vm3 = vcmask 1006592   ;;  %v1324_v15 = vld [vmem:[%s1680_s2 + $0x8] sm:$0xff]  ;;  %vm487_vm4 = vcmask 1031168   ;;  %vm613_vm5 = vcmask 1014784  }
   0xe   : > { %s328_s8 = scalar_lea.vmem %s1678_s0, %s1361_s28  ;;  %s1363_s9 = sadd.s32 8, %s1361_s28  ;;  %1463 = vset.pattern.permute.xlu0 %v1499_v4  ;;  %v1327_v28 = vld [vmem:[%s1680_s2 + $0x10] sm:$0xff]  ;;  %v1330_v29 = vld [vmem:[%s1680_s2 + $0x18] sm:$0xff]  ;;  %vm739_vm6 = vcmask 998400   ;;  %vm802_vm7 = vcmask 990208   ;;  %vm865_vm8 = vcmask 982016  }
   0xf   : > { %s337_s12 = scalar_lea.vmem %s1679_s1, %s1363_s9  ;;  %v346_v0 = vld [vmem:[%s328_s8] sm:$0xff]  ;;  %v1336_v43 = vld [vmem:[%s1680_s2 + $0x28] sm:$0xff]  ;;  %vm928_vm9 = vcmask 973824   ;;  %vm991_vm10 = vcmask 965632   ;;  %v1339_v50 = vld [vmem:[%s1680_s2 + $0x30] sm:$0xff]  ;;  %vm357_vm11 = vcmask 15360  }
  0x10   : > { %v348_v1 = vld [vmem:[%s337_s12] sm:$0xff]  ;;  %383 = vmatpush.msra.mxu0 %v346_v0  ;;  %v1342_v51 = vld [vmem:[%s1680_s2 + $0x38] sm:$0xff]  ;;  %v1348_v54 = vld [vmem:[%s1680_s2 + $0x48] sm:$0xff]  ;;  %v1500_v4 = vmov 0.0  }
  0x11   : > { %v1401_v2 = vpack.i.bf16 %v348_v1, %v346_v0  ;;  %403 = vmatpush.msra.mxu1 %v348_v1  ;;  %1322 = vmatmul.msk.f32.vlgmr.msra.gmra.mxu0 %vm364_vm0, %v361_v3  ;;  %v1333_v42 = vld [vmem:[%s1680_s2 + $0x20] sm:$0xff]  ;;  %v1351_v56 = vld [vmem:[%s1680_s2 + $0x50] sm:$0xff]  ;;  %1084 = vst.msk [vmem:[#allocation4 + $0x8] sm:$0xff] %vm357_vm11, %v1500_v4  ;;  %v1355_v4 = vld [vmem:[%s1683_s5 + $0x8] sm:$0x3f] }
  0x12   : > { %1323 = vmatmul.msk.f32.vlgmr.msra.gmra.mxu1 %vm364_vm0, %v361_v3  ;;  %v1345_v53 = vld [vmem:[%s1680_s2 + $0x40] sm:$0xff] }
  0x13   : > { %1402 = vrot.lane.b32.xlu0 %v1401_v2, %s1489_s13  ;;  %1412 = vrot.lane.b32.xlu1 %v1401_v2, %s1490_s14  ;;  %v1067_v55 = vld [vmem:[%s1682_s4] sm:$0xff] }
  0x14   : > { %1422 = vrot.lane.b32.xlu2 %v1401_v2, %s1491_s15  ;;  %v1104_v57 = vld [vmem:[%s1684_s6] sm:$0x3f] }
  0x1b   : > { %1407 = vrot.lane.b32.xlu0 %v1401_v2, %s1492_s16  ;;  %1417 = vrot.lane.b32.xlu1 %v1401_v2, %s1493_s17 }
  0x1c   : > { %1427 = vrot.lane.b32.xlu2 %v1401_v2, %s1494_s18 }
  0x23   : > { %1432 = vrot.lane.b32.xlu0 %v1401_v2, %s1495_s19  ;;  %1437 = vrot.lane.b32.xlu1 %v1401_v2, %s1496_s20 }
  0x24   : > { %1442 = vrot.lane.b32.xlu2 %v1401_v2, %s1497_s21  ;;  %s1321_s21 = sshll.u32 %s1691_s24, 3 }
  0x25   : > { %s345_s28 = scalar_lea.vmem %s1685_s7, %s1321_s21 }
  0x2b   : > { %1447 = vrot.lane.b32.xlu0 %v1401_v2, %s1498_s22  ;;  %353 = vperm.xlu1 %1451, %v350_v5  }
  0x2c   : > { %1070 = vperm.xlu2 %1452, %v1067_v55  }
  0x34   : > { %1107 = vperm.xlu2 %1452, %v1104_v57  }
  0x6e   : > { %v1423_v6 = vpop.permute.xlu2 %1422 }
  0x6f   : > { %v1425_v9 = vunpack.i.h.bf16 %v1423_v6  ;;  %v1424_v10 = vunpack.i.l.bf16 %v1423_v6 }
  0x71   : > { %v677_v19 = vsel %vm676_vm3, %v1424_v10, %v1425_v9 }
  0x76   : > { %v1428_v18 = vpop.permute.xlu2 %1427 }
  0x77   : > { %v1430_v22 = vunpack.i.h.bf16 %v1428_v18  ;;  %v1429_v23 = vunpack.i.l.bf16 %v1428_v18 }
  0x79   : > { %v740_v32 = vsel %vm739_vm6, %v1429_v23, %v1430_v22  ;;  %v1051_v23 = vlaneseq }
  0x7e   : > { %v1443_v33 = vpop.permute.xlu2 %1442 }
  0x7f   : > { %v1445_v36 = vunpack.i.h.bf16 %v1443_v33  ;;  %v1444_v37 = vunpack.i.l.bf16 %v1443_v33 }
  0x81   : > { %v929_v46 = vsel %vm928_vm9, %v1444_v37, %v1445_v36 }
  0x85   : > { %v1403_v7 = vpop.permute.xlu0 %1402  ;;  %v1413_v8 = vpop.permute.xlu1 %1412 }
  0x86   : > { %v1404_v11 = vunpack.i.l.bf16 %v1403_v7  ;;  %v1405_v12 = vunpack.i.h.bf16 %v1403_v7  ;;  %v1414_v13 = vunpack.i.l.bf16 %v1413_v8  ;;  %v1415_v14 = vunpack.i.h.bf16 %v1413_v8  ;;  %v1071_v63 = vpop.permute.xlu2 %1070 }
  0x88   : > { %466 = vmatpush.msra.mxu3 %v1405_v12  ;;  %v425_v16 = vsel %vm424_vm1, %v1404_v11, %v1405_v12  ;;  %v551_v17 = vsel %vm550_vm2, %v1414_v13, %v1415_v14 }
  0x89   : > { %446 = vmatpush.msra.mxu2 %v425_v16  ;;  %1326 = vmatmul.msk.f32.vlgmr.msra.gmra.mxu3 %vm364_vm0, %v1324_v15 }
  0x8a   : > { %1325 = vmatmul.msk.f32.vlgmr.msra.gmra.mxu2 %vm364_vm0, %v1324_v15  ;;  %592 = vmatpush.msrb.mxu3 %v1415_v14 }
  0x8b   : > { %572 = vmatpush.msrb.mxu2 %v551_v17 }
  0x8c   : > { %718 = vmatpush.msra.mxu3 %v1425_v9 }
  0x8d   : > { %698 = vmatpush.msra.mxu2 %v677_v19  ;;  %v1408_v20 = vpop.permute.xlu0 %1407  ;;  %v1418_v21 = vpop.permute.xlu1 %1417 }
  0x8e   : > { %v1409_v24 = vunpack.i.l.bf16 %v1408_v20  ;;  %v1410_v25 = vunpack.i.h.bf16 %v1408_v20  ;;  %v1420_v26 = vunpack.i.h.bf16 %v1418_v21  ;;  %v1419_v27 = vunpack.i.l.bf16 %v1418_v21  ;;  %v385_v62 = vpop.f32.mrf.mxu0  ;;  %v1108_v6 = vpop.permute.xlu2 %1107 }
  0x8f   : > { %v405_v60 = vpop.f32.mrf.mxu1  ;;  %1110 = vst [vmem:[#allocation5] sm:$0x3f] %v1108_v6 }
  0x90   : > { %529 = vmatpush.msrb.mxu1 %v1410_v25  ;;  %v488_v30 = vsel %vm487_vm4, %v1409_v24, %v1410_v25  ;;  %v614_v31 = vsel %vm613_vm5, %v1419_v27, %v1420_v26  ;;  %v1052_v27 = vand.u32 127, %v1051_v23 }
  0x91   : > { %509 = vmatpush.msrb.mxu0 %v488_v30  ;;  %1329 = vmatmul.msk.f32.vlgmr.msrb.gmra.mxu1 %vm364_vm0, %v1327_v28 }
  0x92   : > { %1328 = vmatmul.msk.f32.vlgmr.msrb.gmra.mxu0 %vm364_vm0, %v1327_v28  ;;  %1331 = vmatmul.msk.f32.vlgmr.msrb.gmra.mxu2 %vm364_vm0, %v1330_v29 }
  0x93   : > { %1332 = vmatmul.msk.f32.vlgmr.msrb.gmra.mxu3 %vm364_vm0, %v1330_v29  ;;  %655 = vmatpush.msra.mxu1 %v1420_v26 }
  0x94   : > { %635 = vmatpush.msra.mxu0 %v614_v31 }
  0x95   : > { %781 = vmatpush.msrb.mxu1 %v1430_v22  ;;  %v1433_v34 = vpop.permute.xlu0 %1432  ;;  %v1438_v35 = vpop.permute.xlu1 %1437 }
  0x96   : > { %761 = vmatpush.msrb.mxu0 %v740_v32  ;;  %v1435_v38 = vunpack.i.h.bf16 %v1433_v34  ;;  %v1434_v39 = vunpack.i.l.bf16 %v1433_v34  ;;  %v1440_v40 = vunpack.i.h.bf16 %v1438_v35  ;;  %v1439_v41 = vunpack.i.l.bf16 %v1438_v35 }
  0x97   : > { %v1055_v32 = vadd.s32 4294967295, %v1052_v27 }
  0x98   : > { %844 = vmatpush.msrb.mxu3 %v1435_v38  ;;  %v803_v44 = vsel %vm802_vm7, %v1434_v39, %v1435_v38  ;;  %v866_v45 = vsel %vm865_vm8, %v1439_v41, %v1440_v40 }
  0x99   : > { %1335 = vmatmul.msk.f32.vlgmr.msra.gmra.mxu1 %vm364_vm0, %v1333_v42  ;;  %824 = vmatpush.msrb.mxu2 %v803_v44  ;;  %vm1057_vm12 = vcmp.ge.s32.totalorder %v1055_v32, 0  ;;  %vm1059_vm13 = vcmp.lt.s32.totalorder %v1055_v32, 16 }
  0x9a   : > { %1334 = vmatmul.msk.f32.vlgmr.msra.gmra.mxu0 %vm364_vm0, %v1333_v42  ;;  %1337 = vmatmul.msk.f32.vlgmr.msra.gmra.mxu2 %vm364_vm0, %v1336_v43  ;;  %vm1061_vm14 = vmand %vm1057_vm12, %vm1059_vm13 }
  0x9b   : > { %1338 = vmatmul.msk.f32.vlgmr.msra.gmra.mxu3 %vm364_vm0, %v1336_v43  ;;  %907 = vmatpush.msra.mxu1 %v1440_v40  ;;  %v1181_v40 = vld [vmem:[#allocation4 + $0x8] sm:$0xff]  ;;  %v1112_v43 = vld [vmem:[%s1683_s5] sm:$0x3f] }
  0x9c   : > { %887 = vmatpush.msra.mxu0 %v866_v45  ;;  %970 = vmatpush.msra.mxu3 %v1445_v36 }
  0x9d   : > { %950 = vmatpush.msra.mxu2 %v929_v46  ;;  %v1448_v47 = vpop.permute.xlu0 %1447  ;;  %v354_v58 = vpop.permute.xlu1 %353 }
  0x9e   : > { %v1450_v48 = vunpack.i.h.bf16 %v1448_v47  ;;  %v1449_v49 = vunpack.i.l.bf16 %v1448_v47  ;;  %358 = vst.msk [vmem:[#allocation3 + $0x8] sm:$0xff] %vm357_vm11, %v354_v58  ;;  %v408_v7 = vadd.f32 %v385_v62, %v354_v58 }
  0xa0   : > { %v992_v52 = vsel %vm991_vm10, %v1449_v49, %v1450_v48 }
  0xa1   : > { %1341 = vmatmul.msk.f32.vlgmr.msrb.gmra.mxu1 %vm364_vm0, %v1339_v50 }
  0xa2   : > { %1340 = vmatmul.msk.f32.vlgmr.msrb.gmra.mxu0 %vm364_vm0, %v1339_v50  ;;  %1343 = vmatmul.msk.f32.vlgmr.msrb.gmra.mxu2 %vm364_vm0, %v1342_v51 }
  0xa3   : > { %1344 = vmatmul.msk.f32.vlgmr.msrb.gmra.mxu3 %vm364_vm0, %v1342_v51  ;;  %1033 = vmatpush.msrb.mxu1 %v1450_v48 }
  0xa4   : > { %1013 = vmatpush.msrb.mxu0 %v992_v52 }
  0xa5   : > { %v360_v59 = vld [vmem:[#allocation3 + $0x8] sm:$0xff] }
  0xa6   : > { %v409_v61 = vadd.f32 %v405_v60, %v360_v59 }
  0xa8   : > { %411 = vst.msk [vmem:[#allocation3 + $0x8] sm:$0xff] %vm357_vm11, %v409_v61 }
  0xa9   : > { %1347 = vmatmul.msk.f32.vlgmr.msra.gmra.mxu1 %vm364_vm0, %v1345_v53 }
  0xaa   : > { %1346 = vmatmul.msk.f32.vlgmr.msra.gmra.mxu0 %vm364_vm0, %v1345_v53  ;;  %1349 = vmatmul.msk.f32.vlgmr.msra.gmra.mxu2 %vm364_vm0, %v1348_v54 }
  0xab   : > { %1350 = vmatmul.msk.f32.vlgmr.msra.gmra.mxu3 %vm364_vm0, %v1348_v54 }
  0xaf   : > { %v413_v0 = vld [vmem:[#allocation3 + $0x8] sm:$0xff] }
  0xb1   : > { %1353 = vmatmul.msk.f32.vlgmr.msrb.gmra.mxu1 %vm364_vm0, %v1351_v56 }
  0xb2   : > { %1352 = vmatmul.msk.f32.vlgmr.msrb.gmra.mxu0 %vm364_vm0, %v1351_v56 }
 0x10c   : > { %v468_v1 = vpop.f32.mrf.mxu3 }
 0x10d   : > { %v448_v2 = vpop.f32.mrf.mxu2  ;;  %v472_v3 = vadd.f32 %v468_v1, %v413_v0 }
 0x10e   : > { %v531_v8 = vpop.f32.mrf.mxu1  ;;  %v471_v10 = vadd.f32 %v448_v2, %v408_v7 }
 0x10f   : > { %474 = vst.msk [vmem:[#allocation3 + $0x8] sm:$0xff] %vm357_vm11, %v472_v3  ;;  %v511_v5 = vpop.f32.mrf.mxu0 }
 0x110   : > { %v534_v14 = vadd.f32 %v511_v5, %v471_v10  ;;  %v1357_v5 = vld [vmem:[%s1683_s5 + $0x10] sm:$0x3f] }
 0x115   : > { %v574_v9 = vpop.f32.mrf.mxu2 }
 0x116   : > { %v476_v11 = vld [vmem:[#allocation3 + $0x8] sm:$0xff]  ;;  %v597_v15 = vadd.f32 %v574_v9, %v534_v14  ;;  %v594_v17 = vpop.f32.mrf.mxu3  ;;  %v657_v28 = vpop.f32.mrf.mxu1 }
 0x117   : > { %v535_v12 = vadd.f32 %v531_v8, %v476_v11  ;;  %v637_v13 = vpop.f32.mrf.mxu0  ;;  %v1111_v8 = vld [vmem:[#allocation5] sm:$0x3f] }
 0x118   : > { %v660_v20 = vadd.f32 %v637_v13, %v597_v15 }
 0x119   : > { %537 = vst.msk [vmem:[#allocation3 + $0x8] sm:$0xff] %vm357_vm11, %v535_v12 }
 0x11d   : > { %v700_v16 = vpop.f32.mrf.mxu2 }
 0x11e   : > { %v723_v22 = vadd.f32 %v700_v16, %v660_v20  ;;  %v720_v38 = vpop.f32.mrf.mxu3  ;;  %v783_v47 = vpop.f32.mrf.mxu1 }
 0x11f   : > { %v763_v18 = vpop.f32.mrf.mxu0 }
 0x120   : > { %v539_v19 = vld [vmem:[#allocation3 + $0x8] sm:$0xff]  ;;  %v786_v25 = vadd.f32 %v763_v18, %v723_v22 }
 0x121   : > { %v598_v21 = vadd.f32 %v594_v17, %v539_v19 }
 0x123   : > { %600 = vst.msk [vmem:[#allocation3 + $0x8] sm:$0xff] %vm357_vm11, %v598_v21 }
 0x125   : > { %v826_v24 = vpop.f32.mrf.mxu2 }
 0x126   : > { %v849_v29 = vadd.f32 %v826_v24, %v786_v25  ;;  %v846_v50 = vpop.f32.mrf.mxu3  ;;  %v909_v53 = vpop.f32.mrf.mxu1 }
 0x127   : > { %v889_v26 = vpop.f32.mrf.mxu0 }
 0x128   : > { %v912_v33 = vadd.f32 %v889_v26, %v849_v29 }
 0x12a   : > { %v602_v30 = vld [vmem:[#allocation3 + $0x8] sm:$0xff] }
 0x12b   : > { %v661_v31 = vadd.f32 %v657_v28, %v602_v30 }
 0x12d   : > { %663 = vst.msk [vmem:[#allocation3 + $0x8] sm:$0xff] %vm357_vm11, %v661_v31  ;;  %v952_v34 = vpop.f32.mrf.mxu2 }
 0x12e   : > { %v975_v35 = vadd.f32 %v952_v34, %v912_v33  ;;  %v972_v56 = vpop.f32.mrf.mxu3  ;;  %v1035_v59 = vpop.f32.mrf.mxu1 }
 0x12f   : > { %v1015_v36 = vpop.f32.mrf.mxu0 }
 0x130   : > { %v1038_v37 = vadd.f32 %v1015_v36, %v975_v35 }
 0x132   : > { %vm1065_vm15 = vcmp.gt.f32.partialorder %v1038_v37, 0.0  ;;  %v1073_v39 = vmul.f32 %v1071_v63, %v1038_v37 }
 0x134   : > { %v665_v41 = vld [vmem:[#allocation3 + $0x8] sm:$0xff]  ;;  %v1075_v42 = vsel %vm1065_vm15, %v1038_v37, %v1073_v39 }
 0x135   : > { %v724_v44 = vadd.f32 %v720_v38, %v665_v41  ;;  %v1081_v45 = vsel %vm1061_vm14, %v1075_v42, 0.0  ;;  %1464 = vmatpush.msk.msrb.mxu2 %vm1061_vm14, %v1075_v42 }
 0x136   : > { %v1458_v46 = vpack.i.bf16 %v1181_v40, %v1081_v45  ;;  %1354 = vmatmul.msk.f32.vlgmr.msrb.gmra.mxu2 %vm364_vm0, %v1112_v43 }
 0x137   : > { %726 = vst.msk [vmem:[#allocation3 + $0x8] sm:$0xff] %vm357_vm11, %v724_v44 }
 0x138   : > { %1459 = vrot.lane.b32.xlu1 %v1458_v46, %s1492_s16  ;;  %1454 = vrot.lane.b32.xlu0 %v1458_v46, %s1489_s13 }
 0x13e   : > { %v728_v48 = vld [vmem:[#allocation3 + $0x8] sm:$0xff] }
 0x13f   : > { %v787_v49 = vadd.f32 %v783_v47, %v728_v48 }
 0x141   : > { %789 = vst.msk [vmem:[#allocation3 + $0x8] sm:$0xff] %vm357_vm11, %v787_v49 }
 0x148   : > { %v791_v51 = vld [vmem:[#allocation3 + $0x8] sm:$0xff] }
 0x149   : > { %v850_v52 = vadd.f32 %v846_v50, %v791_v51 }
 0x14b   : > { %852 = vst.msk [vmem:[#allocation3 + $0x8] sm:$0xff] %vm357_vm11, %v850_v52 }
 0x152   : > { %v854_v54 = vld [vmem:[#allocation3 + $0x8] sm:$0xff] }
 0x153   : > { %v913_v55 = vadd.f32 %v909_v53, %v854_v54 }
 0x155   : > { %915 = vst.msk [vmem:[#allocation3 + $0x8] sm:$0xff] %vm357_vm11, %v913_v55 }
 0x15c   : > { %v917_v57 = vld [vmem:[#allocation3 + $0x8] sm:$0xff] }
 0x15d   : > { %v976_v58 = vadd.f32 %v972_v56, %v917_v57 }
 0x15f   : > { %978 = vst.msk [vmem:[#allocation3 + $0x8] sm:$0xff] %vm357_vm11, %v976_v58 }
 0x166   : > { %v980_v60 = vld [vmem:[#allocation3 + $0x8] sm:$0xff] }
 0x167   : > { %v1039_v61 = vadd.f32 %v1035_v59, %v980_v60 }
 0x169   : > { %1041 = vst.msk [vmem:[#allocation3 + $0x8] sm:$0xff] %vm357_vm11, %v1039_v61 }
 0x1aa   : > { %v1460_v62 = vpop.permute.xlu1 %1459  ;;  %v1455_v63 = vpop.permute.xlu0 %1454 }
 0x1ab   : > { %v1462_v0 = vunpack.i.h.bf16 %v1460_v62  ;;  %v1461_v1 = vunpack.i.l.bf16 %v1460_v62  ;;  %v1457_v2 = vunpack.i.h.bf16 %v1455_v63  ;;  %v1456_v3 = vunpack.i.l.bf16 %v1455_v63 }
 0x1ad   : > { %v1150_v6 = vsel %vm424_vm1, %v1456_v3, %v1457_v2  ;;  %v1188_v7 = vsel %vm487_vm4, %v1461_v1, %v1462_v0 }
 0x1ae   : > { %1170 = vmatpush.msrb.mxu3 %v1150_v6  ;;  %1208 = vmatpush.msra.mxu0 %v1188_v7 }
 0x1af   : > { %1356 = vmatmul.msk.f32.vlgmr.msrb.gmra.mxu3 %vm364_vm0, %v1355_v4  ;;  %1358 = vmatmul.msk.f32.vlgmr.msra.gmra.mxu0 %vm364_vm0, %v1357_v5 }
 0x1b9   : > { %v1134_v9 = vpop.f32.mrf.mxu2 }
 0x1ba   : > { %v1137_v10 = vadd.f32 %v1134_v9, %v1111_v8 }
 0x1bc   : > { %1138 = vst [vmem:[#allocation5] sm:$0x3f] %v1137_v10 }
 0x1c3   : > { %v1139_v11 = vld [vmem:[#allocation5] sm:$0x3f] }
 0x22c   : > { %v1210_v14 = vpop.f32.mrf.mxu0 }
 0x232   : > { %v1172_v12 = vpop.f32.mrf.mxu3 }
 0x233   : > { %v1175_v13 = vadd.f32 %v1172_v12, %v1139_v11 }
 0x235   : > { %1176 = vst [vmem:[#allocation5] sm:$0x3f] %v1175_v13 }
 0x23c   : > { %v1177_v15 = vld [vmem:[#allocation5] sm:$0x3f] }
 0x23d   : > { %v1213_v16 = vadd.f32 %v1210_v14, %v1177_v15 }
 0x23f   : > { %1214 = vst [vmem:[#allocation5] sm:$0x3f] %v1213_v16 }
 0x246   : > { %v1215_v17 = vld [vmem:[#allocation5] sm:$0x3f] }
 0x247   : > { %1216 = vst [vmem:[%s345_s28] sm:$0x3f] %v1215_v17 }
 0x248 PF: > { %s17_s26 = sadd.s32 1, %s1487_s26   ;;  %s1686_s24 = smov %s1483_s25 }
 0x249   : > { %p14_p5 = scmp.ge.s32.totalorder %s17_s26, 4   ;;  %s1687_s25 = smov %s1689_s27 }
 0x24b   :  { %16 = sbr.rel (!%p14_p5) target bundleno = 2 (0x2), region = 101 }

</bundles_post_ra>
